<compile_context>
chip_gen: v5e
topology: v5e:2x2
jax: 0.10.0
libtpu: 0.0.40
codegen_flags: <defaults>
</compile_context>

<pallas_src>
import math
from functools import partial

import jax
import jax.numpy as jnp
from jax import lax
from jax.experimental import pallas as pl
from jax.experimental.pallas import tpu as pltpu


def _round_up(x: int, m: int) -> int:
    return (x + m - 1) // m * m


def _mlp_kernel(x_ref, w1_ref, b1_ref, w2_ref, b2_ref, o_ref, *, s1, s2):
    # x_ref : (TM, In_pad)   bf16
    # w1_ref: (H_pad, In_pad) bf16   (PyTorch (out, in) layout — contract over in)
    # b1_ref: (1, H_pad)      f32    (already scaled by beta)
    # w2_ref: (O_pad, H_pad)  bf16
    # b2_ref: (1, O_pad)      f32    (already scaled by beta)
    x = x_ref[...]

    # Layer 1: bf16 MXU, f32 accumulate; FMA epilogue (scale + beta*bias), ReLU on VPU.
    acc1 = lax.dot_general(
        x, w1_ref[...],
        dimension_numbers=(((1,), (1,)), ((), ())),
        preferred_element_type=jnp.float32,
    )                                                   # (TM, H_pad) f32
    h = jnp.maximum(acc1 * s1 + b1_ref[...], 0.0)

    # Layer 2: feed the MXU bf16 again, accumulate in f32.
    acc2 = lax.dot_general(
        h.astype(jnp.bfloat16), w2_ref[...],
        dimension_numbers=(((1,), (1,)), ((), ())),
        preferred_element_type=jnp.float32,
    )                                                   # (TM, O_pad) f32
    o_ref[...] = (acc2 * s2 + b2_ref[...]).astype(o_ref.dtype)


def single_layer_mlp(x, w1, b1, w2, b2, *, input_size, hidden_size, output_size, beta=0.1):
    """Forward pass of SingleLayerMLP.

    x  : any shape whose trailing dims flatten to input_size (e.g. NCHW image batch)
    w1 : (hidden_size, input_size)   -- PyTorch convention (out, in)
    b1 : (hidden_size,)
    w2 : (output_size, hidden_size)
    b2 : (output_size,)
    """
    x2d = x.reshape(-1, input_size)
    batch = x2d.shape[0]

    # Lane-dense padding of the feature dims (zero padding preserves the math).
    in_pad = _round_up(input_size, 128)
    hid_pad = _round_up(hidden_size, 128)
    out_pad = _round_up(output_size, 128)

    # Batch tiling: sublane-align, cap tile at 512 rows, pad batch to a tile multiple.
    batch8 = _round_up(batch, 8)
    tm = min(512, batch8)
    batch_pad = _round_up(batch8, tm)

    # Zero-padded, bf16 MXU operands (weights kept in PyTorch (out, in) layout — no transpose).
    x_p = (jnp.zeros((batch_pad, in_pad), jnp.bfloat16)
           .at[:batch, :input_size].set(x2d.astype(jnp.bfloat16)))
    w1_p = (jnp.zeros((hid_pad, in_pad), jnp.bfloat16)
            .at[:hidden_size, :input_size].set(w1.astype(jnp.bfloat16)))
    w2_p = (jnp.zeros((out_pad, hid_pad), jnp.bfloat16)
            .at[:output_size, :hidden_size].set(w2.astype(jnp.bfloat16)))
    # beta folded into the bias rows; padded columns are zero so nothing leaks.
    b1_p = (jnp.zeros((1, hid_pad), jnp.float32)
            .at[0, :hidden_size].set(beta * b1.astype(jnp.float32)))
    b2_p = (jnp.zeros((1, out_pad), jnp.float32)
            .at[0, :output_size].set(beta * b2.astype(jnp.float32)))

    kernel = partial(
        _mlp_kernel,
        s1=1.0 / math.sqrt(input_size),   # scales use the ORIGINAL fan-in, not the padded one
        s2=1.0 / math.sqrt(hidden_size),
    )

    out = pl.pallas_call(
        kernel,
        out_shape=jax.ShapeDtypeStruct((batch_pad, out_pad), jnp.float32),
        grid=(batch_pad // tm,),
        in_specs=[
            pl.BlockSpec((tm, in_pad), lambda i: (i, 0)),        # x: streamed per batch tile
            pl.BlockSpec((hid_pad, in_pad), lambda i: (0, 0)),   # W1: resident across the grid
            pl.BlockSpec((1, hid_pad), lambda i: (0, 0)),        # beta*b1
            pl.BlockSpec((out_pad, hid_pad), lambda i: (0, 0)),  # W2: resident across the grid
            pl.BlockSpec((1, out_pad), lambda i: (0, 0)),        # beta*b2
        ],
        out_specs=pl.BlockSpec((tm, out_pad), lambda i: (i, 0)),
        compiler_params=pltpu.CompilerParams(
            dimension_semantics=("parallel",),  # batch tiles are independent -> megacore shard
        ),
    )(x_p, w1_p, b1_p, w2_p, b2_p)

    return out[:batch, :output_size]


def _reference(x, w1, b1, w2, b2, *, input_size, hidden_size, beta=0.1):
    x2d = x.reshape(-1, input_size).astype(jnp.float32)
    h = x2d @ w1.T / math.sqrt(input_size) + beta * b1
    h = jnp.maximum(h, 0.0)
    return h @ w2.T / math.sqrt(hidden_size) + beta * b2


if __name__ == "__main__":
    # Small MNIST-like setup: batch=2, 1 channel, 8x8 image -> input_size=64
    batch, C, H, W = 2, 1, 8, 8
    input_size = C * H * W        # 64
    hidden_size = 32
    output_size = 10

    key = jax.random.PRNGKey(0)
    kx, kw1, kb1, kw2, kb2 = jax.random.split(key, 5)

    x = jax.random.normal(kx, (batch, C, H, W), dtype=jnp.float32)
    # own_linear_layer.reset_parameters: weight ~ N(0,1), bias ~ N(0,1)
    w1 = jax.random.normal(kw1, (hidden_size, input_size), dtype=jnp.float32)
    b1 = jax.random.normal(kb1, (hidden_size,), dtype=jnp.float32)
    w2 = jax.random.normal(kw2, (output_size, hidden_size), dtype=jnp.float32)
    b2 = jax.random.normal(kb2, (output_size,), dtype=jnp.float32)

    out = single_layer_mlp(
        x, w1, b1, w2, b2,
        input_size=input_size, hidden_size=hidden_size, output_size=output_size,
    )
    out = jax.block_until_ready(out)

    ref = _reference(x, w1, b1, w2, b2, input_size=input_size, hidden_size=hidden_size)
    assert out.shape == (batch, output_size), out.shape
    # bf16 MXU operands with f32 accumulation: tolerance loosened accordingly.
    assert jnp.allclose(out, ref, atol=7e-2, rtol=5e-2), float(jnp.max(jnp.abs(out - ref)))

    print("KERNEL_OK")
</pallas_src>

<mosaic_0001>
module attributes {stable_mosaic.version = 11 : i64} {
  func.func @_mlp_kernel(%arg0: i32, %arg1: memref<8x128xbf16, #tpu.memory_space<vmem>>, %arg2: memref<128x128xbf16, #tpu.memory_space<vmem>>, %arg3: memref<1x128xf32, #tpu.memory_space<vmem>>, %arg4: memref<128x128xbf16, #tpu.memory_space<vmem>>, %arg5: memref<1x128xf32, #tpu.memory_space<vmem>>, %arg6: memref<8x128xf32, #tpu.memory_space<vmem>>) attributes {dimension_semantics = [#tpu.dimension_semantics<parallel>], iteration_bounds = array<i64: 1>, scalar_prefetch = 0 : i64, scratch_operands = 0 : i64, tpu.core_type = #tpu.core_type<tc>, window_params = [{transform_indices = @transform_0, window_bounds = array<i64: 8, 128>}, {pipeline_mode = #tpu.pipeline_mode<synchronous>, transform_indices = @transform_1, window_bounds = array<i64: 128, 128>}, {pipeline_mode = #tpu.pipeline_mode<synchronous>, transform_indices = @transform_2, window_bounds = array<i64: 1, 128>}, {pipeline_mode = #tpu.pipeline_mode<synchronous>, transform_indices = @transform_3, window_bounds = array<i64: 128, 128>}, {pipeline_mode = #tpu.pipeline_mode<synchronous>, transform_indices = @transform_4, window_bounds = array<i64: 1, 128>}, {transform_indices = @transform_5, window_bounds = array<i64: 8, 128>}]} {
    %c0 = arith.constant 0 : index
    %c0_0 = arith.constant 0 : index
    %0 = vector.load %arg1[%c0, %c0_0] : memref<8x128xbf16, #tpu.memory_space<vmem>>, vector<8x128xbf16>
    %c0_1 = arith.constant 0 : index
    %c0_2 = arith.constant 0 : index
    %1 = vector.load %arg2[%c0_1, %c0_2] : memref<128x128xbf16, #tpu.memory_space<vmem>>, vector<128x128xbf16>
    %cst = arith.constant dense<0.000000e+00> : vector<8x128xf32>
    %2 = tpu.matmul %0, %1, %cst {dimension_numbers = #tpu.dot_dimension_numbers<[1], [1], [0], [0], [0, 0, 1, 0], [], []>} : vector<8x128xbf16>, vector<128x128xbf16>, vector<8x128xf32> -> vector<8x128xf32>
    %cst_3 = arith.constant 1.250000e-01 : f32
    %3 = vector.broadcast %cst_3 : f32 to vector<8x128xf32>
    %4 = arith.mulf %2, %3 : vector<8x128xf32>
    %c0_4 = arith.constant 0 : index
    %c0_5 = arith.constant 0 : index
    %5 = vector.load %arg3[%c0_4, %c0_5] : memref<1x128xf32, #tpu.memory_space<vmem>>, vector<1x128xf32>
    %6 = vector.broadcast %5 : vector<1x128xf32> to vector<8x128xf32>
    %7 = arith.addf %4, %6 : vector<8x128xf32>
    %cst_6 = arith.constant 0.000000e+00 : f32
    %8 = vector.broadcast %cst_6 : f32 to vector<8x128xf32>
    %9 = arith.maximumf %7, %8 : vector<8x128xf32>
    %10 = arith.truncf %9 : vector<8x128xf32> to vector<8x128xbf16>
    %c0_7 = arith.constant 0 : index
    %c0_8 = arith.constant 0 : index
    %11 = vector.load %arg4[%c0_7, %c0_8] : memref<128x128xbf16, #tpu.memory_space<vmem>>, vector<128x128xbf16>
    %cst_9 = arith.constant dense<0.000000e+00> : vector<8x128xf32>
    %12 = tpu.matmul %10, %11, %cst_9 {dimension_numbers = #tpu.dot_dimension_numbers<[1], [1], [0], [0], [0, 0, 1, 0], [], []>} : vector<8x128xbf16>, vector<128x128xbf16>, vector<8x128xf32> -> vector<8x128xf32>
    %cst_10 = arith.constant 0.176776692 : f32
    %13 = vector.broadcast %cst_10 : f32 to vector<8x128xf32>
    %14 = arith.mulf %12, %13 : vector<8x128xf32>
    %c0_11 = arith.constant 0 : index
    %c0_12 = arith.constant 0 : index
    %15 = vector.load %arg5[%c0_11, %c0_12] : memref<1x128xf32, #tpu.memory_space<vmem>>, vector<1x128xf32>
    %16 = vector.broadcast %15 : vector<1x128xf32> to vector<8x128xf32>
    %17 = arith.addf %14, %16 : vector<8x128xf32>
    %c0_13 = arith.constant 0 : index
    %c0_14 = arith.constant 0 : index
    %18 = vector.load %arg6[%c0_13, %c0_14] : memref<8x128xf32, #tpu.memory_space<vmem>>, vector<8x128xf32>
    tpu.vector_store %arg6[%c0_13, %c0_14], %17 {strides = array<i32>} : memref<8x128xf32, #tpu.memory_space<vmem>>, vector<8x128xf32>,
    return
  }
  func.func @transform_0(%arg0: i32) -> (i32, i32) {
    %c0_i32 = arith.constant 0 : i32
    %c0_i32_0 = arith.constant 0 : i32
    return %arg0, %c0_i32 : i32, i32
  }
  func.func @transform_1(%arg0: i32) -> (i32, i32) {
    %c0_i32 = arith.constant 0 : i32
    %c0_i32_0 = arith.constant 0 : i32
    %c0_i32_1 = arith.constant 0 : i32
    return %c0_i32, %c0_i32_0 : i32, i32
  }
  func.func @transform_2(%arg0: i32) -> (i32, i32) {
    %c0_i32 = arith.constant 0 : i32
    %c0_i32_0 = arith.constant 0 : i32
    %c0_i32_1 = arith.constant 0 : i32
    return %c0_i32, %c0_i32_0 : i32, i32
  }
  func.func @transform_3(%arg0: i32) -> (i32, i32) {
    %c0_i32 = arith.constant 0 : i32
    %c0_i32_0 = arith.constant 0 : i32
    %c0_i32_1 = arith.constant 0 : i32
    return %c0_i32, %c0_i32_0 : i32, i32
  }
  func.func @transform_4(%arg0: i32) -> (i32, i32) {
    %c0_i32 = arith.constant 0 : i32
    %c0_i32_0 = arith.constant 0 : i32
    %c0_i32_1 = arith.constant 0 : i32
    return %c0_i32, %c0_i32_0 : i32, i32
  }
  func.func @transform_5(%arg0: i32) -> (i32, i32) {
    %c0_i32 = arith.constant 0 : i32
    %c0_i32_0 = arith.constant 0 : i32
    return %arg0, %c0_i32 : i32, i32
  }
}

</mosaic_0001>

<bundles_post_ra>
// kernel: tpu_custom_call.1
= control target key start
LH: loop header
LB: loop body
LE: loop exit
PB: predicated region body
PF: predicated region fallthrough
CT: control target
= control target key end

     0   :  { %10 = vsyncpa [#allocation3], 0  ;;  %s498_s0 = inlined_call_operand.hbm [shape: bf16[8,128], index: 0, kind: input, shape index: {}]   ;;  %s499_s1 = inlined_call_operand.hbm [shape: bf16[128,128], index: 1, kind: input, shape index: {}]   ;;  %s500_s2 = inlined_call_operand.vmem [shape: f32[1,128], index: 2, kind: input, shape index: {}]   ;;  %s501_s3 = inlined_call_operand.hbm [shape: bf16[128,128], index: 3, kind: input, shape index: {}]   ;;  %s502_s4 = inlined_call_operand.vmem [shape: f32[1,128], index: 4, kind: input, shape index: {}]   ;;  %s503_s5 = inlined_call_operand.hbm [shape: f32[8,128], index: 5, kind: output, shape index: {}]  }
   0x1   :  { %11 = vsyncpa [#allocation6], 0  ;;  %s28_s20 = sshll.u32 %s499_s1, 4  ;;  %s29_s20 = int_to_ptr.hbm [resolvable:$true] %s28_s20 }
   0x2   :  { %12 = vsyncpa [#allocation4], 0  ;;  %s444_s21 = smov [#allocation5]   ;;  %s18_s25 = sshll.u32 %s498_s0, 4  ;;  %s19_s25 = int_to_ptr.hbm [resolvable:$true] %s18_s25 }
   0x3   :  { %s30_s22 = sshll.u32 %s444_s21, 4  ;;  %s445_s26 = smov 64   ;;  %s31_s22 = int_to_ptr.vmem [resolvable:$true] %s30_s22 }
   0x4   :  { %s446_s27 = smov 4   ;;  %s447_s28 = smov [#allocation2]  }
   0x5   :  { %36 = dma.hbm_to_vmem [thread:$0]  %s29_s20, 1024, %s31_s22, [#allocation6], %s445_s26, %s445_s26, %s446_s27  }
   0x6   :  { %s20_s29 = sshll.u32 %s447_s28, 4  ;;  %s43_s7 = sshll.u32 %s501_s3, 4  ;;  %s21_s29 = int_to_ptr.vmem [resolvable:$true] %s20_s29  ;;  %s44_s7 = int_to_ptr.hbm [resolvable:$true] %s43_s7 }
   0x7   :  { %23 = dma.hbm_to_vmem [thread:$0]  %s19_s25, 64, %s21_s29, [#allocation3]  }
   0x8   :  { %s448_s1 = smov [#allocation7]  }
   0x9   :  { %s45_s8 = sshll.u32 %s448_s1, 4  ;;  %s46_s8 = int_to_ptr.vmem [resolvable:$true] %s45_s8 }
   0xa   :  { %51 = dma.hbm_to_vmem [thread:$0]  %s44_s7, 1024, %s46_s8, [#allocation6], %s445_s26, %s445_s26, %s446_s27  }
   0xb   :  { %438 = dma.done.wait [#allocation3], 64  }
   0xc   :  { %439 = vsyncadd [#allocation3], 4294967232 }
   0xd   :  { %440 = dma.done.wait [#allocation6], 2048  }
   0xe   :  { %441 = vsyncadd [#allocation6], 4294965248  ;;  %v325_v0 = vld [vmem:[#allocation5 + $0x38] sm:$0xff]  ;;  %v324_v1 = vld [vmem:[#allocation5 + $0x30] sm:$0xff]  ;;  %s449_s11 = smov [#allocation8]   ;;  %s243_s15 = sshll.u32 %s503_s5, 4  ;;  %s244_s15 = int_to_ptr.hbm [resolvable:$true] %s243_s15 }
   0xf   :  { %131 = vmatpush.bf16.xpose.msra.mxu0 %v325_v0  ;;  %v323_v2 = vld [vmem:[#allocation5 + $0x28] sm:$0xff]  ;;  %v322_v3 = vld [vmem:[#allocation5 + $0x20] sm:$0xff]  ;;  %v321_v4 = vld [vmem:[#allocation5 + $0x18] sm:$0xff]  ;;  %s241_s12 = sshll.u32 %s449_s11, 4  ;;  %s242_s12 = int_to_ptr.vmem [resolvable:$true] %s241_s12 }
  0x10   :  { %v333_v5 = vld [vmem:[#allocation7 + $0x38] sm:$0xff]  ;;  %v320_v6 = vld [vmem:[#allocation5 + $0x10] sm:$0xff]  ;;  %v319_v8 = vld [vmem:[#allocation5 + $0x8] sm:$0xff] }
  0x11   :  { %216 = vmatpush.bf16.xpose.msra.mxu1 %v333_v5  ;;  %v332_v7 = vld [vmem:[#allocation7 + $0x30] sm:$0xff]  ;;  %v331_v9 = vld [vmem:[#allocation7 + $0x28] sm:$0xff]  ;;  %v318_v10 = vld [vmem:[#allocation5] sm:$0xff] }
  0x12   :  { %v330_v11 = vld [vmem:[#allocation7 + $0x20] sm:$0xff]  ;;  %v66_v12 = vld [vmem:[#allocation2] sm:$0xf]  ;;  %v328_v14 = vld [vmem:[#allocation7 + $0x10] sm:$0xff] }
  0x13   :  { %v329_v13 = vld [vmem:[#allocation7 + $0x18] sm:$0xff]  ;;  %v327_v15 = vld [vmem:[#allocation7 + $0x8] sm:$0xff]  ;;  %v326_v16 = vld [vmem:[#allocation7] sm:$0xff] }
  0x14   :  { %v340_v17 = vld [vmem:[%s500_s2] ss:$0 sm:$0xff] }
  0x15   :  { %v341_v24 = vld [vmem:[%s502_s4] ss:$0 sm:$0xff] }
  0x17   :  { %132 = vmatpush.bf16.xpose.msra.mxu0 %v324_v1 }
  0x19   :  { %217 = vmatpush.bf16.xpose.msra.mxu1 %v332_v7 }
  0x1f   :  { %133 = vmatpush.bf16.xpose.msra.mxu0 %v323_v2 }
  0x21   :  { %218 = vmatpush.bf16.xpose.msra.mxu1 %v331_v9 }
  0x27   :  { %134 = vmatpush.bf16.xpose.msra.mxu0 %v322_v3 }
  0x29   :  { %219 = vmatpush.bf16.xpose.msra.mxu1 %v330_v11 }
  0x2f   :  { %135 = vmatpush.bf16.xpose.msra.mxu0 %v321_v4 }
  0x31   :  { %220 = vmatpush.bf16.xpose.msra.mxu1 %v329_v13 }
  0x37   :  { %136 = vmatpush.bf16.xpose.msra.mxu0 %v320_v6 }
  0x39   :  { %221 = vmatpush.bf16.xpose.msra.mxu1 %v328_v14 }
  0x3f   :  { %137 = vmatpush.bf16.xpose.msra.mxu0 %v319_v8 }
  0x41   :  { %222 = vmatpush.bf16.xpose.msra.mxu1 %v327_v15 }
  0x47   :  { %138 = vmatpush.bf16.xpose.msra.mxu0 %v318_v10 }
  0x49   :  { %223 = vmatpush.bf16.xpose.msra.mxu1 %v326_v16 }
  0x4e   :  { %139 = vmatmul.bf16.vlgmr.msra.gmra.mxu0 %v66_v12 }
  0xcb   :  { %v140_v18 = vpop.f32.mrf.mxu0 }
  0xcc   :  { %v144_v19 = vmul.f32 0.125, %v140_v18 }
  0xce   :  { %v149_v20 = vadd.f32 %v340_v17, %v144_v19 }
  0xd0   :  { %v150_v21 = vmax.f32 %v149_v20, 0.0 }
  0xd2   :  { %v151_v22 = vpack.c.bf16 %v150_v21, %v150_v21 }
  0xd3   :  { %v142_v23 = vpop.f32.mrf.mxu0 }
  0xd4   :  { %224 = vmatmul.bf16.vlgmr.msra.gmra.mxu1 %v151_v22 }
 0x151   :  { %v225_v25 = vpop.f32.mrf.mxu1 }
 0x152   :  { %v229_v26 = vmul.f32 0.17677669, %v225_v25 }
 0x154   :  { %v234_v27 = vadd.f32 %v341_v24, %v229_v26 }
 0x156   :  { %235 = vst [vmem:[#allocation8] sm:$0xff] %v234_v27 }
 0x157   :  { %246 = dma.vmem_to_hbm [thread:$0]  %s242_s12, 128, %s244_s15, [#allocation4]  }
 0x159   :  { %v227_v28 = vpop.f32.mrf.mxu1 }
 0x15a   :  { %442 = dma.done.wait [#allocation4], 128  }
 0x15b   :  { %443 = vsyncadd [#allocation4], 4294967168 }
 0x15c   :  { %251 = vsyncpa [#allocation3], 1 }
 0x15d   :  { %252 = vsyncpa [#allocation6], 1 }
 0x15e   :  { %253 = vsyncpa [#allocation4], 1 }

</bundles_post_ra>
